<compile_context>
chip_gen: v7x
topology: tpu7x:2x2x1
jax: 0.10.0
libtpu: 0.0.40
codegen_flags: <defaults>
</compile_context>

<pallas_src>
import functools

import jax
import jax.numpy as jnp
from jax.experimental import pallas as pl
from jax.experimental.pallas import tpu as pltpu


def _round_up(n, m):
    return ((n + m - 1) // m) * m


def fcnn_kernel(x_ref, w1_ref, b1_ref, w2_ref, o_ref, *, input_dim, tanh_in_bf16):
    # x_ref:  [Kp, TB]        f32  feature-major input tile (rows >= input_dim are zero)
    # w1_ref: [hidden, Kp]    f32  layer-1 weight (cols >= input_dim are zero)
    # b1_ref: [hidden, 1]     f32  layer-1 bias as a column
    # w2_ref: [C_pad, hidden] bf16 layer-2 weight (rows >= num_classes are zero)
    # o_ref:  [C_pad, TB]     f32  feature-major output tile (lane-dense store)
    if input_dim <= 16:
        # Layer 1 on the VPU: input_dim broadcast-FMAs in f32 (exact).
        # w1[:, k] -> [hidden, 1] lane broadcast; x[k, :] -> [1, TB] sublane
        # broadcast; both cheap in the feature-major layout.
        h = b1_ref[...]                                       # [hidden, 1]
        for k in range(input_dim):                            # static unroll (K tiny)
            h = h + w1_ref[:, k:k + 1] * x_ref[k:k + 1, :]    # -> [hidden, TB] f32
    else:
        # Fallback for larger input_dim: MXU matmul, bf16 in / f32 accumulate.
        # (Padded rows/cols are zero on both operands, so this stays correct.)
        h = jnp.dot(w1_ref[...].astype(jnp.bfloat16),
                    x_ref[...].astype(jnp.bfloat16),
                    preferred_element_type=jnp.float32) + b1_ref[...]

    if tanh_in_bf16:
        # v6e/v7x: bf16 EUP doubles tanh throughput; the result feeds a bf16
        # MXU matmul anyway, so output accuracy is unchanged.
        p = jnp.tanh(h.astype(jnp.bfloat16))
    else:
        # v5e: no bf16 EUP -> keep tanh in f32, cast only for the MXU.
        p = jnp.tanh(h).astype(jnp.bfloat16)

    # Layer 2 on the MXU: [C_pad, hidden] @ [hidden, TB] -> [C_pad, TB] f32.
    # Padded class rows are zero weights; they are sliced off in the wrapper.
    out = jnp.dot(w2_ref[...], p, preferred_element_type=jnp.float32)

    # Single contiguous, lane-dense store (TB is a multiple of 128).
    o_ref[...] = out.astype(o_ref.dtype)


def prepare_params(w1, b1, w2):
    """One-time prep for the feature-major kernel (NOT on the per-call path).

    w1: [hidden, input_dim], b1: [hidden], w2: [num_classes, hidden] (PyTorch layout).
    Returns (w1_pad [hidden, Kp] f32, b1_col [hidden, 1] f32,
             w2_pad [C_pad, hidden] bf16, num_classes, input_dim).
    """
    hidden, input_dim = w1.shape
    num_classes = w2.shape[0]
    Kp = _round_up(input_dim, 8)
    C_pad = _round_up(num_classes, 8)

    w1p = jnp.zeros((hidden, Kp), jnp.float32).at[:, :input_dim].set(
        w1.astype(jnp.float32))
    b1c = b1.astype(jnp.float32).reshape(hidden, 1)
    w2p = jnp.zeros((C_pad, hidden), jnp.bfloat16).at[:num_classes, :].set(
        w2.astype(jnp.bfloat16))
    return w1p, b1c, w2p, num_classes, input_dim


def _bf16_tanh_ok():
    # bf16 tanh on the EUP exists on v6e/v7x; keep f32 tanh on v5-generation.
    try:
        kind = jax.devices()[0].device_kind.lower()
        return "v5" not in kind
    except Exception:
        return True


@functools.partial(jax.jit,
                   static_argnames=("num_classes", "input_dim", "tb", "tanh_in_bf16"))
def _fcnn_forward_impl(x, w1p, b1c, w2p, num_classes, input_dim, tb, tanh_in_bf16):
    B = x.shape[0]
    hidden, Kp = w1p.shape
    C_pad = w2p.shape[0]

    # Batch tiling: lanes carry batch, so TB must be a multiple of 128.
    # Choose the tile count first so padding waste stays small for awkward B,
    # and keep >= 2 grid steps for moderate/large B so both v7x TCs get work.
    min_tiles = 2 if B >= 512 else 1
    num_tiles = max(min_tiles, pl.cdiv(B, tb))
    TB = _round_up(pl.cdiv(B, num_tiles), 128)
    Bp = TB * num_tiles

    # Feature-major input: [Kp, Bp]; padded rows / columns are zero.
    xt = jnp.zeros((Kp, Bp), jnp.float32).at[:input_dim, :B].set(
        x.astype(jnp.float32).T)

    kernel = functools.partial(fcnn_kernel, input_dim=input_dim,
                               tanh_in_bf16=tanh_in_bf16)

    out_t = pl.pallas_call(
        kernel,
        out_shape=jax.ShapeDtypeStruct((C_pad, Bp), jnp.float32),
        grid=(num_tiles,),
        in_specs=[
            pl.BlockSpec((Kp, TB), lambda i: (0, i)),         # x: tiled over batch lanes
            pl.BlockSpec((hidden, Kp), lambda i: (0, 0)),     # w1: VMEM-resident
            pl.BlockSpec((hidden, 1), lambda i: (0, 0)),      # b1: VMEM-resident
            pl.BlockSpec((C_pad, hidden), lambda i: (0, 0)),  # w2: VMEM-resident
        ],
        out_specs=pl.BlockSpec((C_pad, TB), lambda i: (0, i)),
        compiler_params=pltpu.CompilerParams(
            dimension_semantics=("parallel",),   # shard batch tiles across TCs
            vmem_limit_bytes=32 * 1024 * 1024,   # safe on v5e/v6e/v7x; tiles are tiny
        ),
    )(xt, w1p, b1c, w2p)

    # Back to batch-major [B, num_classes].
    return out_t[:num_classes, :B].T.astype(x.dtype)


def fcnn_forward(x, w1p, b1c, w2p, num_classes, input_dim, tb=8192, tanh_in_bf16=None):
    """x: [B, input_dim]. Params come from prepare_params (pre-padded / bf16-cast)."""
    if tanh_in_bf16 is None:
        tanh_in_bf16 = _bf16_tanh_ok()
    return _fcnn_forward_impl(x, w1p, b1c, w2p, num_classes, input_dim, tb, tanh_in_bf16)


def init_params(key, input_dim=2, hidden_dim=64, num_classes=2):
    # Deterministic init mimicking nn.Linear's U(-1/sqrt(fan_in), 1/sqrt(fan_in)).
    k1, k2, k3 = jax.random.split(key, 3)
    bound1 = 1.0 / jnp.sqrt(input_dim)
    bound2 = 1.0 / jnp.sqrt(hidden_dim)
    w1 = jax.random.uniform(k1, (hidden_dim, input_dim), jnp.float32, -bound1, bound1)
    b1 = jax.random.uniform(k2, (hidden_dim,), jnp.float32, -bound1, bound1)
    w2 = jax.random.uniform(k3, (num_classes, hidden_dim), jnp.float32, -bound2, bound2)
    return w1, b1, w2


if __name__ == "__main__":
    key = jax.random.PRNGKey(0)
    kx, kp = jax.random.split(key)

    B, input_dim, hidden_dim, num_classes = 8, 2, 64, 2
    x = jax.random.normal(kx, (B, input_dim), jnp.float32)
    w1, b1, w2 = init_params(kp, input_dim, hidden_dim, num_classes)

    # One-time param prep (pad / reshape / bf16 cast).
    w1p, b1c, w2p, nc, k = prepare_params(w1, b1, w2)

    out = fcnn_forward(x, w1p, b1c, w2p, num_classes=nc, input_dim=k)
    out = jax.block_until_ready(out)

    # Pure-JAX f32 reference. Layer 1 is exact f32; tanh/layer-2 use bf16 on
    # the EUP/MXU, so allow bf16-level tolerance.
    ref = jnp.tanh(x @ w1.T + b1) @ w2.T
    assert out.shape == (B, num_classes), out.shape
    assert jnp.allclose(out, ref, atol=5e-2, rtol=5e-2), jnp.max(jnp.abs(out - ref))

    print("KERNEL_OK")
</pallas_src>

<mosaic_0001>
module attributes {stable_mosaic.version = 11 : i64} {
  func.func @fcnn_kernel(%arg0: i32, %arg1: memref<8x128xf32, #tpu.memory_space<vmem>>, %arg2: memref<64x8xf32, #tpu.memory_space<vmem>>, %arg3: memref<64x1xf32, #tpu.memory_space<vmem>>, %arg4: memref<8x64xbf16, #tpu.memory_space<vmem>>, %arg5: memref<8x128xf32, #tpu.memory_space<vmem>>) attributes {dimension_semantics = [#tpu.dimension_semantics<parallel>], iteration_bounds = array<i64: 1>, scalar_prefetch = 0 : i64, scratch_operands = 0 : i64, tpu.core_type = #tpu.core_type<tc>, window_params = [{transform_indices = @transform_0, window_bounds = array<i64: 8, 128>}, {pipeline_mode = #tpu.pipeline_mode<synchronous>, transform_indices = @transform_1, window_bounds = array<i64: 64, 8>}, {pipeline_mode = #tpu.pipeline_mode<synchronous>, transform_indices = @transform_2, window_bounds = array<i64: 64, 1>}, {pipeline_mode = #tpu.pipeline_mode<synchronous>, transform_indices = @transform_3, window_bounds = array<i64: 8, 64>}, {transform_indices = @transform_4, window_bounds = array<i64: 8, 128>}]} {
    %c0 = arith.constant 0 : index
    %c0_0 = arith.constant 0 : index
    %0 = vector.load %arg3[%c0, %c0_0] : memref<64x1xf32, #tpu.memory_space<vmem>>, vector<64x1xf32>
    %c0_1 = arith.constant 0 : index
    %c0_2 = arith.constant 0 : index
    %1 = vector.load %arg2[%c0_1, %c0_2] : memref<64x8xf32, #tpu.memory_space<vmem>>, vector<64x1xf32>
    %c0_3 = arith.constant 0 : index
    %c0_4 = arith.constant 0 : index
    %2 = vector.load %arg1[%c0_3, %c0_4] : memref<8x128xf32, #tpu.memory_space<vmem>>, vector<1x128xf32>
    %3 = vector.broadcast %1 : vector<64x1xf32> to vector<64x128xf32>
    %4 = vector.broadcast %2 : vector<1x128xf32> to vector<64x128xf32>
    %5 = arith.mulf %3, %4 : vector<64x128xf32>
    %6 = vector.broadcast %0 : vector<64x1xf32> to vector<64x128xf32>
    %7 = arith.addf %6, %5 : vector<64x128xf32>
    %c0_5 = arith.constant 0 : index
    %c1 = arith.constant 1 : index
    %8 = vector.load %arg2[%c0_5, %c1] : memref<64x8xf32, #tpu.memory_space<vmem>>, vector<64x1xf32>
    %c1_6 = arith.constant 1 : index
    %c0_7 = arith.constant 0 : index
    %9 = vector.load %arg1[%c1_6, %c0_7] : memref<8x128xf32, #tpu.memory_space<vmem>>, vector<1x128xf32>
    %10 = vector.broadcast %8 : vector<64x1xf32> to vector<64x128xf32>
    %11 = vector.broadcast %9 : vector<1x128xf32> to vector<64x128xf32>
    %12 = arith.mulf %10, %11 : vector<64x128xf32>
    %13 = arith.addf %7, %12 : vector<64x128xf32>
    %14 = arith.truncf %13 : vector<64x128xf32> to vector<64x128xbf16>
    %15 = math.tanh %14 : vector<64x128xbf16>
    %c0_8 = arith.constant 0 : index
    %c0_9 = arith.constant 0 : index
    %16 = vector.load %arg4[%c0_8, %c0_9] : memref<8x64xbf16, #tpu.memory_space<vmem>>, vector<8x64xbf16>
    %cst = arith.constant dense<0.000000e+00> : vector<8x128xf32>
    %17 = tpu.matmul %16, %15, %cst {dimension_numbers = #tpu.dot_dimension_numbers<[1], [0], [0], [1], [0, 0, 1, 1], [], []>} : vector<8x64xbf16>, vector<64x128xbf16>, vector<8x128xf32> -> vector<8x128xf32>
    %c0_10 = arith.constant 0 : index
    %c0_11 = arith.constant 0 : index
    %18 = vector.load %arg5[%c0_10, %c0_11] : memref<8x128xf32, #tpu.memory_space<vmem>>, vector<8x128xf32>
    tpu.vector_store %arg5[%c0_10, %c0_11], %17 {strides = array<i32>} : memref<8x128xf32, #tpu.memory_space<vmem>>, vector<8x128xf32>,
    return
  }
  func.func @transform_0(%arg0: i32) -> (i32, i32) {
    %c0_i32 = arith.constant 0 : i32
    %c0_i32_0 = arith.constant 0 : i32
    return %c0_i32, %arg0 : i32, i32
  }
  func.func @transform_1(%arg0: i32) -> (i32, i32) {
    %c0_i32 = arith.constant 0 : i32
    %c0_i32_0 = arith.constant 0 : i32
    %c0_i32_1 = arith.constant 0 : i32
    return %c0_i32, %c0_i32_0 : i32, i32
  }
  func.func @transform_2(%arg0: i32) -> (i32, i32) {
    %c0_i32 = arith.constant 0 : i32
    %c0_i32_0 = arith.constant 0 : i32
    %c0_i32_1 = arith.constant 0 : i32
    return %c0_i32, %c0_i32_0 : i32, i32
  }
  func.func @transform_3(%arg0: i32) -> (i32, i32) {
    %c0_i32 = arith.constant 0 : i32
    %c0_i32_0 = arith.constant 0 : i32
    %c0_i32_1 = arith.constant 0 : i32
    return %c0_i32, %c0_i32_0 : i32, i32
  }
  func.func @transform_4(%arg0: i32) -> (i32, i32) {
    %c0_i32 = arith.constant 0 : i32
    %c0_i32_0 = arith.constant 0 : i32
    return %c0_i32, %arg0 : i32, i32
  }
}

</mosaic_0001>

<bundles_post_ra>
// kernel: _fcnn_forward_impl.1
= control target key start
LH: loop header
LB: loop body
LE: loop exit
PB: predicated region body
PF: predicated region fallthrough
CT: control target
= control target key end

     0   :  { %v288_v0 = vmov 0   ;;  %v289_v6 = vmov 1   ;;  %v290_v16 = vmov 0.0   ;;  %vm291_vm0 = vmmov 0   ;;  %s382_s2 = inlined_call_operand.vmem [shape: f32[64,1], index: 2, kind: input, shape index: {}]   ;;  %s383_s1 = inlined_call_operand.vmem [shape: f32[64,8], index: 1, kind: input, shape index: {}]   ;;  %s384_s0 = inlined_call_operand.vmem [shape: f32[8,128], index: 0, kind: input, shape index: {}]   ;;  %s385_s3 = inlined_call_operand.vmem [shape: bf16[8,64], index: 3, kind: input, shape index: {}]   ;;  %s386_s4 = inlined_call_operand.vmem [shape: f32[8,128], index: 4, kind: output, shape index: {}]  }
   0x1   :  { %271 = vset.pattern.permute.xlu1 %v288_v0  ;;  %270 = vset.pattern.permute.xlu0 %v288_v0  ;;  %v18_v1 = vld [vmem:[%s382_s2] sm:$0xff]  ;;  %v19_v3 = vld [vmem:[%s382_s2 + $0x8] sm:$0xff]  ;;  %v29_v5 = vld [vmem:[%s383_s1 + $0x18] sm:$0xff]  ;;  %vm197_vm1 = vcmask 523264  }
   0x2   :  { %v26_v2 = vld [vmem:[%s383_s1] sm:$0xff]  ;;  %89 = vperm.xlu1 %271, %v18_v1   ;;  %v27_v4 = vld [vmem:[%s383_s1 + $0x8] sm:$0xff]  ;;  %v28_v8 = vld [vmem:[%s383_s1 + $0x10] sm:$0xff]  ;;  %254 = vmatprep.subr.bf16.mxu0 %v290_v16 }
   0x3   :  { %37 = vperm.xlu0 %270, %v26_v2   ;;  %v31_v7 = vld [vmem:[%s383_s1 + $0x28] sm:$0xff]  ;;  %v33_v9 = vld [vmem:[%s383_s1 + $0x38] sm:$0xff]  ;;  %v20_v10 = vld [vmem:[%s382_s2 + $0x10] sm:$0xff]  ;;  %262 = vmatprep.mubr.msk.bf16.mxu0 %vm291_vm0, %v290_v16 }
   0x4   :  { %v21_v11 = vld [vmem:[%s382_s2 + $0x18] sm:$0xff]  ;;  %v30_v12 = vld [vmem:[%s383_s1 + $0x20] sm:$0xff]  ;;  %v32_v13 = vld [vmem:[%s383_s1 + $0x30] sm:$0xff] }
   0x5   :  { %v22_v14 = vld [vmem:[%s382_s2 + $0x20] sm:$0xff]  ;;  %v23_v15 = vld [vmem:[%s382_s2 + $0x28] sm:$0xff]  ;;  %v24_v17 = vld [vmem:[%s382_s2 + $0x30] sm:$0xff] }
   0x6   :  { %94 = vperm.xlu1 %271, %v19_v3   ;;  %v25_v18 = vld [vmem:[%s382_s2 + $0x38] sm:$0xff]  ;;  %v246_v27 = vld [vmem:[%s384_s0] ss:$0 sm:$0xff]  ;;  %v247_v29 = vld [vmem:[%s384_s0 + $0x1] ss:$0 sm:$0xff] }
   0x7   :  { %42 = vperm.xlu0 %270, %v27_v4  }
   0xa   :  { %272 = vset.pattern.permute.xlu1 %v289_v6 }
   0xb   :  { %52 = vperm.xlu0 %270, %v29_v5   ;;  %141 = vperm.xlu1 %272, %v27_v4  }
   0xf   :  { %62 = vperm.xlu0 %270, %v31_v7   ;;  %273 = vset.pattern.permute.xlu1 %v288_v0 }
  0x10   :  { %47 = vperm.xlu1 %273, %v28_v8  }
  0x13   :  { %72 = vperm.xlu0 %270, %v33_v9  }
  0x14   :  { %99 = vperm.xlu1 %273, %v20_v10  }
  0x17   :  { %278 = vset.pattern.permute.xlu0 %v289_v6 }
  0x18   :  { %137 = vperm.xlu0 %278, %v26_v2   ;;  %104 = vperm.xlu1 %273, %v21_v11  }
  0x1c   :  { %145 = vperm.xlu0 %278, %v28_v8   ;;  %274 = vset.pattern.permute.xlu1 %v289_v6 }
  0x1d   :  { %149 = vperm.xlu1 %274, %v29_v5  }
  0x20   :  { %153 = vperm.xlu0 %278, %v30_v12  }
  0x21   :  { %275 = vset.pattern.permute.xlu1 %v288_v0 }
  0x22   :  { %57 = vperm.xlu1 %275, %v30_v12  }
  0x24   :  { %161 = vperm.xlu0 %278, %v32_v13  }
  0x26   :  { %109 = vperm.xlu1 %275, %v22_v14  }
  0x2a   :  { %114 = vperm.xlu1 %275, %v23_v15  }
  0x2e   :  { %276 = vset.pattern.permute.xlu1 %v289_v6 }
  0x2f   :  { %157 = vperm.xlu1 %276, %v31_v7  }
  0x33   :  { %277 = vset.pattern.permute.xlu1 %v288_v0 }
  0x34   :  { %67 = vperm.xlu1 %277, %v32_v13  }
  0x38   :  { %119 = vperm.xlu1 %277, %v24_v17  }
  0x3c   :  { %124 = vperm.xlu1 %277, %v25_v18  }
  0x40   :  { %279 = vset.pattern.permute.xlu1 %v289_v6 }
  0x41   :  { %165 = vperm.xlu1 %279, %v33_v9  }
  0x81   :  { %v90_v19 = vpop.permute.xlu1 %89 }
  0x82   :  { %v38_v20 = vpop.permute.xlu0 %37 }
  0x83   :  { %v79_v30 = vmul.f32 %v246_v27, %v38_v20 }
  0x85   :  { %v95_v21 = vpop.permute.xlu1 %94  ;;  %v127_v35 = vadd.f32 %v90_v19, %v79_v30 }
  0x86   :  { %v43_v22 = vpop.permute.xlu0 %42 }
  0x87   :  { %v80_v31 = vmul.f32 %v246_v27, %v43_v22  ;;  %v196_v22 = vld [vmem:[%s385_s3] sm:$0xf] }
  0x89   :  { %v128_v36 = vadd.f32 %v95_v21, %v80_v31 }
  0x8a   :  { %v53_v23 = vpop.permute.xlu0 %52  ;;  %v142_v24 = vpop.permute.xlu1 %141 }
  0x8b   :  { %v173_v33 = vmul.f32 %v247_v29, %v142_v24  ;;  %v82_v40 = vmul.f32 %v246_v27, %v53_v23 }
  0x8d   :  { %v181_v39 = vadd.f32 %v173_v33, %v128_v36 }
  0x8e   :  { %v63_v25 = vpop.permute.xlu0 %62 }
  0x8f   :  { %v48_v26 = vpop.permute.xlu1 %47  ;;  %v84_v59 = vmul.f32 %v246_v27, %v63_v25 }
  0x90   :  { %v81_v43 = vmul.f32 %v246_v27, %v48_v26 }
  0x92   :  { %v73_v28 = vpop.permute.xlu0 %72 }
  0x93   :  { %v100_v32 = vpop.permute.xlu1 %99  ;;  %v86_v10 = vmul.f32 %v246_v27, %v73_v28 }
  0x94   :  { %v129_v47 = vadd.f32 %v100_v32, %v81_v43 }
  0x97   :  { %v138_v34 = vpop.permute.xlu0 %137  ;;  %v105_v38 = vpop.permute.xlu1 %104 }
  0x98   :  { %v172_v37 = vmul.f32 %v247_v29, %v138_v34  ;;  %v130_v48 = vadd.f32 %v105_v38, %v82_v40 }
  0x9a   :  { %v180_v41 = vadd.f32 %v172_v37, %v127_v35 }
  0x9b   :  { %v146_v42 = vpop.permute.xlu0 %145 }
  0x9c   :  { %v188_v44 = vpack.c.bf16 %v181_v39, %v180_v41  ;;  %v174_v45 = vmul.f32 %v247_v29, %v146_v42  ;;  %v150_v46 = vpop.permute.xlu1 %149 }
  0x9d   :  { %v175_v49 = vmul.f32 %v247_v29, %v150_v46 }
  0x9e   :  { %280 = vtanh.bf16 %v188_v44  ;;  %v182_v50 = vadd.f32 %v174_v45, %v129_v47 }
  0x9f   :  { %v183_v51 = vadd.f32 %v175_v49, %v130_v48  ;;  %v154_v57 = vpop.permute.xlu0 %153 }
  0xa0   :  { %v176_v61 = vmul.f32 %v247_v29, %v154_v57 }
  0xa1   :  { %v189_v52 = vpack.c.bf16 %v183_v51, %v182_v50  ;;  %v58_v53 = vpop.permute.xlu1 %57 }
  0xa2   :  { %v83_v58 = vmul.f32 %v246_v27, %v58_v53 }
  0xa3   :  { %282 = vtanh.bf16 %v189_v52  ;;  %v162_v9 = vpop.permute.xlu0 %161 }
  0xa4   :  { %v178_v14 = vmul.f32 %v247_v29, %v162_v9 }
  0xa5   :  { %v110_v54 = vpop.permute.xlu1 %109 }
  0xa6   :  { %v131_v60 = vadd.f32 %v110_v54, %v83_v58 }
  0xa8   :  { %v184_v2 = vadd.f32 %v176_v61, %v131_v60 }
  0xa9   :  { %v281_v55 = vpop.eup %280  ;;  %v115_v56 = vpop.permute.xlu1 %114 }
  0xaa   :  { %255 = vmatpush3.bf16.msra.mxu0 %v281_v55  ;;  %v132_v0 = vadd.f32 %v115_v56, %v84_v59 }
  0xab   :  { %256 = vmatprep.subr.bf16.mxu0 %v290_v16 }
  0xae   :  { %v283_v62 = vpop.eup %282  ;;  %v158_v63 = vpop.permute.xlu1 %157 }
  0xaf   :  { %v177_v1 = vmul.f32 %v247_v29, %v158_v63  ;;  %257 = vmatpush3.bf16.msra.mxu0 %v283_v62 }
  0xb0   :  { %258 = vmatprep.subr.bf16.mxu0 %v290_v16 }
  0xb1   :  { %v185_v3 = vadd.f32 %v177_v1, %v132_v0 }
  0xb3   :  { %v190_v4 = vpack.c.bf16 %v185_v3, %v184_v2  ;;  %v68_v5 = vpop.permute.xlu1 %67 }
  0xb4   :  { %v85_v8 = vmul.f32 %v246_v27, %v68_v5 }
  0xb5   :  { %284 = vtanh.bf16 %v190_v4 }
  0xb7   :  { %v120_v6 = vpop.permute.xlu1 %119 }
  0xb8   :  { %v133_v11 = vadd.f32 %v120_v6, %v85_v8 }
  0xba   :  { %v186_v18 = vadd.f32 %v178_v14, %v133_v11 }
  0xbb   :  { %v125_v7 = vpop.permute.xlu1 %124 }
  0xbc   :  { %v134_v15 = vadd.f32 %v125_v7, %v86_v10 }
  0xc0   :  { %v285_v12 = vpop.eup %284  ;;  %v166_v13 = vpop.permute.xlu1 %165 }
  0xc1   :  { %v179_v17 = vmul.f32 %v247_v29, %v166_v13  ;;  %259 = vmatpush3.bf16.msra.mxu0 %v285_v12 }
  0xc2   :  { %260 = vmatprep.subr.bf16.mxu0 %v290_v16 }
  0xc3   :  { %v187_v19 = vadd.f32 %v179_v17, %v134_v15 }
  0xc5   :  { %v191_v20 = vpack.c.bf16 %v187_v19, %v186_v18 }
  0xc7   :  { %286 = vtanh.bf16 %v191_v20 }
  0xd2   :  { %v287_v21 = vpop.eup %286 }
  0xd3   :  { %261 = vmatpush3.bf16.msra.mxu0 %v287_v21 }
  0xd6   :  { %263 = vmatmul.mubr.msk.bf16.vlgmr.msra.gmra.mrb[0].mxu0 %vm197_vm1, %v196_v22 }
 0x1a9   :  { %v235_v23 = vpop.f32.mrb[0].mxu0 }
 0x1aa   :  { %241 = vst [vmem:[%s386_s4] sm:$0xff] %v235_v23  ;;  %v264_v24 = vpop.f32.mrb[1].mxu0 }
 0x1ab   :  { %v238_v25 = vpop.f32.mrb[2].mxu0 }
 0x1ac   :  { %v265_v16 = vpop.f32.mrb[3].mxu0 }

</bundles_post_ra>
